<compile_context>
chip_gen: v7x
topology: tpu7x:2x2x1
jax: 0.10.0
libtpu: 0.0.40
codegen_flags: <defaults>
</compile_context>

<pallas_src>
import functools

import jax
import jax.numpy as jnp
from jax.experimental import pallas as pl
from jax.experimental.pallas import tpu as pltpu


def _round_up(x, m):
    return ((x + m - 1) // m) * m


def _scores_kernel(x_ref, w_ref, c_ref, o_ref):
    """One batch tile: o = x_tile @ W - c.  W/c blocks are grid-invariant."""
    # Trace-time choice: exact f32 MXU passes for f32 operands, native bf16
    # (f32 accumulate) otherwise.
    precision = (jax.lax.Precision.HIGHEST
                 if x_ref.dtype == jnp.float32 else None)
    acc = jnp.dot(x_ref[...], w_ref[...],
                  preferred_element_type=jnp.float32,
                  precision=precision)                       # (tb, Cpad) f32
    o_ref[...] = (acc - c_ref[...]).astype(o_ref.dtype)      # f32 VPU epilogue


@functools.partial(jax.jit, static_argnames=("block_b",))
def _slda_scores(x_pad, w_pad, c_pad, block_b):
    """Batch-tiled, lane-dense scores GEMM: (Bpad, D) @ (D, Cpad) - (1, Cpad)."""
    b_pad, d = x_pad.shape
    c_lanes = w_pad.shape[1]
    grid = (b_pad // block_b,)
    return pl.pallas_call(
        _scores_kernel,
        out_shape=jax.ShapeDtypeStruct((b_pad, c_lanes), jnp.float32),
        grid=grid,
        in_specs=[
            pl.BlockSpec((block_b, d), lambda i: (i, 0)),     # x: tiled over B
            pl.BlockSpec((d, c_lanes), lambda i: (0, 0)),     # W: resident
            pl.BlockSpec((1, c_lanes), lambda i: (0, 0)),     # c: resident, f32
        ],
        out_specs=pl.BlockSpec((block_b, c_lanes), lambda i: (i, 0)),
        compiler_params=pltpu.CompilerParams(
            dimension_semantics=("parallel",)),               # megacore on v7x
    )(x_pad, w_pad, c_pad)


def slda_predict_pallas(x, w_pad, c_pad, size_out, *, block_b=256):
    """Initiated-path forward: scores = x @ W - c (W, c precomputed/padded)."""
    b, _ = x.shape
    tb = min(block_b, _round_up(b, 8))
    b_pad = _round_up(b, tb)
    x_p = x.astype(w_pad.dtype)
    if b_pad != b:
        x_p = jnp.pad(x_p, ((0, b_pad - b), (0, 0)))
    out = _slda_scores(x_p, w_pad, c_pad, tb)
    return out[:b, :size_out]


class SLDALayerPallas:
    """Mirrors the PyTorch SLDALayer forward (predict on the initiated path)."""

    def __init__(self, size_in, size_out, shrinkage_param=0.0001, seed=0,
                 compute_dtype=jnp.float32, block_b=256):
        self.size_in = size_in
        self.size_out = size_out
        self.shrinkage_param = float(shrinkage_param)
        self.compute_dtype = compute_dtype
        self.block_b = block_b
        self.initiated = False
        # Deterministic synthetic StreamingLDA state (muK, Sigma).  Sigma is a
        # well-conditioned PSD covariance.
        k_mu, k_sig = jax.random.split(jax.random.PRNGKey(seed))
        self.mu_k = jax.random.normal(k_mu, (size_out, size_in), jnp.float32)
        a = jax.random.normal(k_sig, (size_in, size_in), jnp.float32)
        self.sigma = (a @ a.T) / size_in + jnp.eye(size_in, dtype=jnp.float32)
        self._cache = None   # (W_padded, c_padded); recomputed lazily

    def invalidate_cache(self):
        """Call after Sigma/muK change (i.e. after accumulate/fit)."""
        self._cache = None

    def _params(self):
        if self._cache is None:
            hp = jax.lax.Precision.HIGHEST
            s = self.shrinkage_param
            eye = jnp.eye(self.size_in, dtype=jnp.float32)
            # O(D^3) SVD stays in glue and is amortized across forward calls.
            lam = jnp.linalg.pinv((1.0 - s) * self.sigma + s * eye)
            m = self.mu_k.T                                     # (D, C)
            w = jnp.dot(lam, m, precision=hp)                   # (D, C)
            c = 0.5 * jnp.sum(m * w, axis=0)                    # (C,)
            # Lane-dense padding of the class dim up to a multiple of 128.
            c_lanes = _round_up(self.size_out, 128)
            w_pad = jnp.zeros((self.size_in, c_lanes), self.compute_dtype)
            w_pad = w_pad.at[:, :self.size_out].set(w.astype(self.compute_dtype))
            c_pad = jnp.zeros((1, c_lanes), jnp.float32)
            c_pad = c_pad.at[:, :self.size_out].set(c.astype(jnp.float32))
            self._cache = (w_pad, c_pad)
        return self._cache

    def __call__(self, x, rng_key=None):
        if self.initiated:
            w_pad, c_pad = self._params()
            return slda_predict_pallas(x, w_pad, c_pad, self.size_out,
                                       block_b=self.block_b)
        # Non-initiated path: torch.randn((B, size_out)) equivalent.
        if rng_key is None:
            rng_key = jax.random.PRNGKey(0)
        return jax.random.normal(rng_key, (x.shape[0], self.size_out),
                                 jnp.float32)


def _reference(x, sigma, mu_k, shrink):
    hp = jax.lax.Precision.HIGHEST
    d = x.shape[1]
    lam = jnp.linalg.pinv((1.0 - shrink) * sigma
                          + shrink * jnp.eye(d, dtype=jnp.float32))
    m = mu_k.T
    w = jnp.dot(lam, m, precision=hp)
    c = 0.5 * jnp.sum(m * w, axis=0)
    return jnp.dot(x, w, precision=hp) - c


if __name__ == "__main__":
    B, D, C = 8, 32, 16  # batch, size_in, size_out

    layer = SLDALayerPallas(size_in=D, size_out=C, seed=0)
    layer.initiated = True  # exercise the StreamingLDA.predict hot path

    x = jax.random.normal(jax.random.PRNGKey(0), (B, D), jnp.float32)

    out = jax.block_until_ready(layer(x))
    ref = _reference(x, layer.sigma, layer.mu_k, layer.shrinkage_param)

    assert out.shape == (B, C)
    # Tolerance covers any MXU f32 precision path; with HIGHEST on both sides
    # the actual error is ~1e-5.
    assert jnp.allclose(out, ref, atol=5e-2, rtol=5e-2), "mismatch vs reference"

    # bf16-operand path (v6e/v7x MXU-native, f32 accumulate, f32 epilogue).
    layer_bf16 = SLDALayerPallas(size_in=D, size_out=C, seed=0,
                                 compute_dtype=jnp.bfloat16)
    layer_bf16.initiated = True
    out_bf16 = jax.block_until_ready(layer_bf16(x))
    assert out_bf16.shape == (B, C)
    assert bool(jnp.all(jnp.isfinite(out_bf16)))
    assert jnp.allclose(out_bf16, ref, atol=0.5, rtol=0.1), "bf16 path mismatch"

    # Non-initiated path: randn, no kernel.
    layer_uninit = SLDALayerPallas(size_in=D, size_out=C, seed=1)
    rnd = jax.block_until_ready(layer_uninit(x, rng_key=jax.random.PRNGKey(1)))
    assert rnd.shape == (B, C)

    print("KERNEL_OK")
</pallas_src>

<mosaic_0001>
module attributes {stable_mosaic.version = 11 : i64} {
  func.func @_scores_kernel(%arg0: i32, %arg1: memref<8x32xf32, #tpu.memory_space<vmem>>, %arg2: memref<32x128xf32, #tpu.memory_space<vmem>>, %arg3: memref<1x128xf32, #tpu.memory_space<vmem>>, %arg4: memref<8x128xf32, #tpu.memory_space<vmem>>) attributes {dimension_semantics = [#tpu.dimension_semantics<parallel>], iteration_bounds = array<i64: 1>, scalar_prefetch = 0 : i64, scratch_operands = 0 : i64, tpu.core_type = #tpu.core_type<tc>, window_params = [{transform_indices = @transform_0, window_bounds = array<i64: 8, 32>}, {pipeline_mode = #tpu.pipeline_mode<synchronous>, transform_indices = @transform_1, window_bounds = array<i64: 32, 128>}, {pipeline_mode = #tpu.pipeline_mode<synchronous>, transform_indices = @transform_2, window_bounds = array<i64: 1, 128>}, {transform_indices = @transform_3, window_bounds = array<i64: 8, 128>}]} {
    %c0 = arith.constant 0 : index
    %c0_0 = arith.constant 0 : index
    %0 = vector.load %arg1[%c0, %c0_0] : memref<8x32xf32, #tpu.memory_space<vmem>>, vector<8x32xf32>
    %c0_1 = arith.constant 0 : index
    %c0_2 = arith.constant 0 : index
    %1 = vector.load %arg2[%c0_1, %c0_2] : memref<32x128xf32, #tpu.memory_space<vmem>>, vector<32x128xf32>
    %cst = arith.constant dense<0.000000e+00> : vector<8x128xf32>
    %2 = tpu.matmul %0, %1, %cst {dimension_numbers = #tpu.dot_dimension_numbers<[1], [0], [0], [1], [0, 0, 1, 1], [], []>, precision = #tpu.contract_precision<fp32>} : vector<8x32xf32>, vector<32x128xf32>, vector<8x128xf32> -> vector<8x128xf32>
    %c0_3 = arith.constant 0 : index
    %c0_4 = arith.constant 0 : index
    %3 = vector.load %arg3[%c0_3, %c0_4] : memref<1x128xf32, #tpu.memory_space<vmem>>, vector<1x128xf32>
    %4 = vector.broadcast %3 : vector<1x128xf32> to vector<8x128xf32>
    %5 = arith.subf %2, %4 : vector<8x128xf32>
    %c0_5 = arith.constant 0 : index
    %c0_6 = arith.constant 0 : index
    %6 = vector.load %arg4[%c0_5, %c0_6] : memref<8x128xf32, #tpu.memory_space<vmem>>, vector<8x128xf32>
    tpu.vector_store %arg4[%c0_5, %c0_6], %5 {strides = array<i32>} : memref<8x128xf32, #tpu.memory_space<vmem>>, vector<8x128xf32>,
    return
  }
  func.func @transform_0(%arg0: i32) -> (i32, i32) {
    %c0_i32 = arith.constant 0 : i32
    %c0_i32_0 = arith.constant 0 : i32
    return %arg0, %c0_i32 : i32, i32
  }
  func.func @transform_1(%arg0: i32) -> (i32, i32) {
    %c0_i32 = arith.constant 0 : i32
    %c0_i32_0 = arith.constant 0 : i32
    %c0_i32_1 = arith.constant 0 : i32
    return %c0_i32, %c0_i32_0 : i32, i32
  }
  func.func @transform_2(%arg0: i32) -> (i32, i32) {
    %c0_i32 = arith.constant 0 : i32
    %c0_i32_0 = arith.constant 0 : i32
    %c0_i32_1 = arith.constant 0 : i32
    return %c0_i32, %c0_i32_0 : i32, i32
  }
  func.func @transform_3(%arg0: i32) -> (i32, i32) {
    %c0_i32 = arith.constant 0 : i32
    %c0_i32_0 = arith.constant 0 : i32
    return %arg0, %c0_i32 : i32, i32
  }
}

</mosaic_0001>

<bundles_post_ra>
// kernel: _slda_scores.1
= control target key start
LH: loop header
LB: loop body
LE: loop exit
PB: predicated region body
PF: predicated region fallthrough
CT: control target
= control target key end

     0   :  { %8 = vsyncpa [#allocation3], 0  ;;  %s880_s0 = inlined_call_operand.hbm [shape: f32[8,32], index: 0, kind: input, shape index: {}]   ;;  %s881_s1 = inlined_call_operand.hbm [shape: f32[32,128], index: 1, kind: input, shape index: {}]   ;;  %s882_s2 = inlined_call_operand.vmem [shape: f32[1,128], index: 2, kind: input, shape index: {}]   ;;  %s883_s3 = inlined_call_operand.hbm [shape: f32[8,128], index: 3, kind: output, shape index: {}]  }
   0x1   :  { %9 = vsyncpa [#allocation6], 0 }
   0x2   :  { %10 = vsyncpa [#allocation4], 0  ;;  %s782_s12 = smov [#allocation2]   ;;  %s783_s14 = smov [#allocation5]  }
   0x3   :  { %s17_s13 = sshll.u32 %s782_s12, 4  ;;  %s26_s15 = sshll.u32 %s783_s14, 4  ;;  %s18_s13 = int_to_ptr.vmem [resolvable:$true] %s17_s13  ;;  %s810_s15 = int_to_ptr.vmem [resolvable:$true] %s26_s15 }
   0x4   :  { %s710_s18 = scalar_lea.hbm %s880_s0, 128 }
   0x5   :  { %p711_p0 = scmp.ne.s32.totalorder %s880_s0, %s710_s18  ;;  %p714_p1 = scmp.lt.u32.totalorder %s710_s18, %s880_s0 }
   0x7   :  { %p716_p2 = pnand %p714_p1, %p711_p0 }
   0x9   :  { %719 = shalt.err (!%p716_p2)
}
   0xa   :  { %s720_s23 = scalar_lea.vmem %s18_s13, 128  ;;  %p725_p4 = scmp.lt.s32.totalorder %s18_s13, %s18_s13 }
   0xb   :  { %p721_p3 = scmp.ne.s32.totalorder %s18_s13, %s720_s23  ;;  %p726_p5 = scmp.lt.s32.totalorder %s720_s23, %s720_s23 }
   0xd   :  { %p727_p6 = por %p726_p5, %p725_p4 }
   0xf   :  { %p728_p7 = pnand %p727_p6, %p721_p3 }
  0x11   :  { %731 = shalt.err (!%p728_p7)
}
  0x12   :  { %20 = dma.hbm_to_vmem [thread:$0]  %s880_s0, 128, %s18_s13, [#allocation3]  }
  0x13   :  { %s732_s28 = scalar_lea.hbm %s881_s1, 512 }
  0x14   :  { %p733_p8 = scmp.ne.s32.totalorder %s881_s1, %s732_s28  ;;  %p736_p9 = scmp.lt.u32.totalorder %s732_s28, %s881_s1 }
  0x16   :  { %p738_p10 = pnand %p736_p9, %p733_p8 }
  0x18   :  { %741 = shalt.err (!%p738_p10)
}
  0x19   :  { %s742_s6 = scalar_lea.vmem %s810_s15, 512  ;;  %p747_p12 = scmp.lt.s32.totalorder %s810_s15, %s810_s15 }
  0x1a   :  { %p743_p11 = scmp.ne.s32.totalorder %s810_s15, %s742_s6  ;;  %p748_p13 = scmp.lt.s32.totalorder %s742_s6, %s742_s6 }
  0x1c   :  { %p749_p0 = por %p748_p13, %p747_p12 }
  0x1e   :  { %p750_p1 = pnand %p749_p0, %p743_p11 }
  0x20   :  { %753 = shalt.err (!%p750_p1)
}
  0x21   :  { %s784_s0 = smov 128   ;;  %s785_s7 = smov 8  }
  0x22   :  { %32 = dma.hbm_to_vmem [thread:$0]  %s881_s1, 512, %s810_s15, [#allocation6], %s784_s0, %s784_s0, %s785_s7  }
  0x23   :  { %776 = dma.done.wait [#allocation3], 128  }
  0x24   :  { %777 = vsyncadd [#allocation3], 4294967168 }
  0x25   :  { %778 = dma.done.wait [#allocation6], 512  }
  0x26   :  { %779 = vsyncadd [#allocation6], 4294966784  ;;  %v786_v0 = vmov 0.0|0.0   ;;  %vm787_vm0 = vmmov 0   ;;  %v788_v1 = vmov 0.0   ;;  %vm46_vm1 = vcmask 261120  }
  0x27   :  { %657 = vmatprep.subr.bf16.mxu1 %v786_v0  ;;  %675 = vmatprep.subr.bf16.mxu0 %v786_v0  ;;  %v42_v2 = vld [vmem:[#allocation5] sm:$0xff]  ;;  %v43_v3 = vld [vmem:[#allocation5 + $0x8] sm:$0xff]  ;;  %v44_v4 = vld [vmem:[#allocation5 + $0x10] sm:$0xff]  ;;  %s789_s11 = smov [#allocation7]  }
  0x28   :  { %599 = vmatprep.mubr.msk.f32.mxu1 %vm787_vm0, %v788_v1  ;;  %632 = vmatprep.mubr.msk.f32.mxu0 %vm787_vm0, %v788_v1  ;;  %v51_v5 = vand.u32 4294901760, %v42_v2  ;;  %v54_v6 = vand.u32 4294901760, %v43_v3  ;;  %v45_v7 = vld [vmem:[#allocation5 + $0x18] sm:$0xff]  ;;  %v57_v8 = vand.u32 4294901760, %v44_v4  ;;  %s550_s12 = sshll.u32 %s789_s11, 4  ;;  %s551_s12 = int_to_ptr.vmem [resolvable:$true] %s550_s12 }
  0x29   :  { %v41_v9 = vld [vmem:[#allocation2] sm:$0xff]  ;;  %v60_v10 = vand.u32 4294901760, %v45_v7  ;;  %s754_s13 = scalar_lea.vmem %s551_s12, 128  ;;  %p759_p3 = scmp.lt.s32.totalorder %s551_s12, %s551_s12 }
  0x2a   :  { %v48_v11 = vsel %vm46_vm1, %v41_v9, 0  ;;  %v658_v12 = vpack.c.bf16 %v54_v6, %v51_v5  ;;  %v131_v13 = vsub.f32 %v42_v2, %v51_v5  ;;  %v138_v14 = vsub.f32 %v43_v3, %v54_v6  ;;  %v560_v44 = vld [vmem:[%s882_s2] ss:$0 sm:$0xff]  ;;  %p755_p2 = scmp.ne.s32.totalorder %s551_s12, %s754_s13  ;;  %p760_p4 = scmp.lt.s32.totalorder %s754_s13, %s754_s13 }
  0x2b   :  { %v145_v15 = vsub.f32 %v44_v4, %v57_v8  ;;  %v152_v16 = vsub.f32 %v45_v7, %v60_v10  ;;  %v119_v17 = vand.u32 4294901760, %v48_v11  ;;  %v661_v18 = vpack.c.bf16 %v60_v10, %v57_v8 }
  0x2c   :  { %659 = vmatpush3.bf16.msra.mxu1 %v658_v12  ;;  %677 = vmatpush3.bf16.msra.mxu0 %v658_v12  ;;  %v132_v19 = vand.u32 4294901760, %v131_v13  ;;  %v139_v20 = vand.u32 4294901760, %v138_v14  ;;  %v670_v39 = vpack.c.bf16 %v138_v14, %v131_v13  ;;  %p761_p5 = por %p760_p4, %p759_p3 }
  0x2d   :  { %v146_v21 = vand.u32 4294901760, %v145_v15  ;;  %660 = vmatprep.subr.bf16.mxu1 %v786_v0  ;;  %678 = vmatprep.subr.bf16.mxu0 %v786_v0  ;;  %v120_v22 = vsub.f32 %v48_v11, %v119_v17  ;;  %v153_v23 = vand.u32 4294901760, %v152_v16  ;;  %v673_v40 = vpack.c.bf16 %v152_v16, %v145_v15 }
  0x2e   :  { %v133_v24 = vsub.f32 %v131_v13, %v132_v19  ;;  %v140_v25 = vsub.f32 %v138_v14, %v139_v20  ;;  %v682_v31 = vpack.c.bf16 %v139_v20, %v132_v19  ;;  %p762_p6 = pnand %p761_p5, %p755_p2 }
  0x2f   :  { %v147_v26 = vsub.f32 %v145_v15, %v146_v21  ;;  %v121_v27 = vand.u32 4294901760, %v120_v22  ;;  %v154_v28 = vsub.f32 %v152_v16, %v153_v23  ;;  %v685_v37 = vpack.c.bf16 %v153_v23, %v146_v21 }
  0x30   :  { %662 = vmatpush3.bf16.msra.mxu1 %v661_v18  ;;  %680 = vmatpush3.bf16.msra.mxu0 %v661_v18  ;;  %v134_v29 = vand.u32 4294901760, %v133_v24  ;;  %v141_v30 = vand.u32 4294901760, %v140_v25 }
  0x31   :  { %v122_v32 = vsub.f32 %v120_v22, %v121_v27  ;;  %663 = vmatprep.subr.bf16.mxu1 %v786_v0  ;;  %681 = vmatprep.subr.bf16.mxu0 %v786_v0  ;;  %v148_v34 = vand.u32 4294901760, %v147_v26  ;;  %v155_v35 = vand.u32 4294901760, %v154_v28 }
  0x32   :  { %v664_v33 = vpack.c.bf16 %v141_v30, %v134_v29 }
  0x33   :  { %v123_v36 = vand.u32 4294901760, %v122_v32  ;;  %633 = vmatmul.mubr.f32.vlgmr.msra.gmra.mrb[0].mxu0 %v121_v27  ;;  %v667_v38 = vpack.c.bf16 %v155_v35, %v148_v34 }
  0x34   :  { %683 = vmatpush3.bf16.msra.mxu0 %v682_v31  ;;  %643 = vmatprep.mubr.msk.f32.mxu0 %vm787_vm0, %v788_v1 }
  0x35   :  { %600 = vmatmul.mubr.f32.vlgmr.msra.gmra.mrb[0].mxu1 %v123_v36  ;;  %684 = vmatprep.subr.bf16.mxu0 %v786_v0 }
  0x36   :  { %665 = vmatpush3.bf16.msra.mxu1 %v664_v33  ;;  %610 = vmatprep.mubr.msk.f32.mxu1 %vm787_vm0, %v788_v1 }
  0x37   :  { %666 = vmatprep.subr.bf16.mxu1 %v786_v0 }
  0x38   :  { %686 = vmatpush3.bf16.msra.mxu0 %v685_v37 }
  0x39   :  { %687 = vmatprep.subr.bf16.mxu0 %v786_v0 }
  0x3a   :  { %668 = vmatpush3.bf16.msra.mxu1 %v667_v38 }
  0x3b   :  { %669 = vmatprep.subr.bf16.mxu1 %v786_v0  ;;  %644 = vmatmul.mubr.f32.vlgmr.msra.gmra.mrb[0].mxu0 %v119_v17 }
  0x3c   :  { %689 = vmatpush3.bf16.msra.mxu0 %v658_v12  ;;  %654 = vmatprep.mubr.msk.f32.mxu0 %vm787_vm0, %v788_v1 }
  0x3d   :  { %611 = vmatmul.mubr.f32.vlgmr.msra.gmra.mrb[0].mxu1 %v119_v17  ;;  %690 = vmatprep.subr.bf16.mxu0 %v786_v0 }
  0x3e   :  { %671 = vmatpush3.bf16.msra.mxu1 %v670_v39  ;;  %621 = vmatprep.mubr.msk.f32.mxu1 %vm787_vm0, %v788_v1 }
  0x3f   :  { %672 = vmatprep.subr.bf16.mxu1 %v786_v0 }
  0x40   :  { %692 = vmatpush3.bf16.msra.mxu0 %v661_v18 }
  0x42   :  { %674 = vmatpush3.bf16.msra.mxu1 %v673_v40 }
  0x43   :  { %655 = vmatmul.mubr.f32.vlgmr.msra.gmra.mrb[0].mxu0 %v119_v17 }
  0x45   :  { %622 = vmatmul.mubr.f32.vlgmr.msra.gmra.mrb[0].mxu1 %v120_v22 }
 0x116   :  { %v531_v41 = vpop.f32.mrb[0].mxu0 }
 0x117   :  { %v656_v42 = vpop.f32.mrb[1].mxu0 }
 0x118   :  { %v296_v43 = vpop.f32.mrb[0].mxu1 }
 0x119   :  { %v693_v45 = vadd.f32 %v531_v41, %v296_v43  ;;  %v623_v46 = vpop.f32.mrb[1].mxu1 }
 0x11b   :  { %v542_v47 = vsub.f32 %v693_v45, %v560_v44 }
 0x11d   :  { %543 = vst [vmem:[#allocation7] sm:$0xff] %v542_v47 }
 0x11e   :  { %765 = shalt.err (!%p762_p6)
}
 0x11f   :  { %s766_s16 = scalar_lea.hbm %s883_s3, 128 }
 0x120   :  { %p767_p7 = scmp.ne.s32.totalorder %s883_s3, %s766_s16  ;;  %p770_p8 = scmp.lt.u32.totalorder %s766_s16, %s883_s3 }
 0x122   :  { %p772_p9 = pnand %p770_p8, %p767_p7 }
 0x124   :  { %775 = shalt.err (!%p772_p9)
}
 0x125   :  { %553 = dma.vmem_to_hbm [thread:$0]  %s551_s12, 128, %s883_s3, [#allocation4]  }
 0x126   :  { %780 = dma.done.wait [#allocation4], 128  }
 0x127   :  { %781 = vsyncadd [#allocation4], 4294967168 }
 0x128   :  { %557 = vsyncpa [#allocation3], 1 }
 0x129   :  { %558 = vsyncpa [#allocation6], 1 }
 0x12a   :  { %559 = vsyncpa [#allocation4], 1 }

</bundles_post_ra>
